<compile_context>
chip_gen: v5e
topology: v5e:2x2
jax: 0.10.0
libtpu: 0.0.40
codegen_flags: <defaults>
</compile_context>

<pallas_src>
import functools
import math

import jax
import jax.numpy as jnp
from jax.experimental import pallas as pl
from jax.experimental.pallas import tpu as pltpu

EPS = 1e-5  # nn.LayerNorm default


def _layer_norm(x, gamma, beta):
    mu = jnp.mean(x, axis=-1, keepdims=True)
    var = jnp.mean((x - mu) ** 2, axis=-1, keepdims=True)
    return (x - mu) * jax.lax.rsqrt(var + EPS) * gamma + beta


def _gelu_exact(x):
    # nn.GELU() default: exact erf-based GELU
    return 0.5 * x * (1.0 + jax.lax.erf(x * (1.0 / math.sqrt(2.0))))


def subcarrier_attention_kernel(
    x_ref,                    # (R, E) f32, R = BB*S rows (batch-major)
    wqkv_ref, bqkv_ref,       # fused QKV projection: (E, 3E) bf16, (1, 3E) f32
    wo_ref,                   # output projection:    (E, E)  bf16
    w1_ref, bf1_ref,          # FFN up:               (E, 2E) bf16, (1, 2E) f32
    w2_ref,                   # FFN down:             (2E, E) bf16
    vecs_ref,                 # (6, E) f32: [bo, g1, be1, bf2, g2, be2]
    o_ref,                    # (R, E)
    *, num_heads, seq_len,
):
    x = x_ref[...]                                    # (R, E) f32
    R, E = x.shape
    S = seq_len
    BB = R // S
    Dh = E // num_heads
    scale = 1.0 / math.sqrt(Dh)
    mxu = jnp.bfloat16                                # MXU operand dtype

    bo  = vecs_ref[0:1, :]
    g1  = vecs_ref[1:2, :]
    be1 = vecs_ref[2:3, :]
    bf2 = vecs_ref[3:4, :]
    g2  = vecs_ref[4:5, :]
    be2 = vecs_ref[5:6, :]

    # ---- fused QKV projection: one MXU dispatch over all R rows ----
    qkv = jnp.dot(x.astype(mxu), wqkv_ref[...],
                  preferred_element_type=jnp.float32) + bqkv_ref[...]  # (R,3E) f32

    # ---- multi-head self attention, batched over the BB block ----
    # Scores / softmax / context per head (H is small, statically unrolled);
    # head contexts are lane-concatenated so the output projection is a
    # single (R,E)@(E,E) matmul instead of H accumulating (R,Dh)@(Dh,E) ones.
    ctx_heads = []
    for h in range(num_heads):
        qh = qkv[:,         h * Dh:        (h + 1) * Dh]        # (R, Dh) f32
        kh = qkv[:,     E + h * Dh:    E + (h + 1) * Dh]
        vh = qkv[:, 2 * E + h * Dh:2 * E + (h + 1) * Dh]
        qh = (qh * scale).reshape(BB, S, Dh).astype(mxu)
        kh = kh.reshape(BB, S, Dh).astype(mxu)
        vh = vh.reshape(BB, S, Dh).astype(mxu)

        s = jnp.einsum('bqd,bkd->bqk', qh, kh,
                       preferred_element_type=jnp.float32)       # (BB,S,S) f32
        s = s - jnp.max(s, axis=-1, keepdims=True)
        p = jnp.exp(s)
        p = p * pl.reciprocal(jnp.sum(p, axis=-1, keepdims=True), approx=True)

        oh = jnp.einsum('bqk,bkd->bqd', p.astype(mxu), vh,
                        preferred_element_type=jnp.float32)      # (BB,S,Dh) f32
        ctx_heads.append(oh.reshape(R, Dh))

    ctx = jnp.concatenate(ctx_heads, axis=-1)                    # (R, E) f32
    attn = jnp.dot(ctx.astype(mxu), wo_ref[...],
                   preferred_element_type=jnp.float32) + bo

    # ---- residual + LayerNorm1 (f32) ----
    x1 = _layer_norm(x + attn, g1, be1)

    # ---- FFN: Linear(E, 2E) -> GELU -> Linear(2E, E) ----
    h1 = jnp.dot(x1.astype(mxu), w1_ref[...],
                 preferred_element_type=jnp.float32) + bf1_ref[...]
    h1 = _gelu_exact(h1)
    h2 = jnp.dot(h1.astype(mxu), w2_ref[...],
                 preferred_element_type=jnp.float32) + bf2

    # ---- residual + LayerNorm2 ----
    o_ref[...] = _layer_norm(x1 + h2, g2, be2).astype(o_ref.dtype)


PARAM_ORDER = ("wqkv", "bqkv", "wo", "w1", "bf1", "w2", "vecs")


def init_params(key, embed_dim, num_heads=4, dtype=jnp.float32,
                mxu_dtype=jnp.bfloat16):
    """Deterministic synthetic parameters matching the PyTorch module's shapes,
    packed for the kernel (fused QKV, bf16 matmul weights, stacked vectors)."""
    E = embed_dim
    ks = jax.random.split(key, 8)
    scale = 0.05

    def rnd(k, shape):
        return scale * jax.random.normal(k, shape, dtype)

    in_proj_w = rnd(ks[0], (3 * E, E))        # nn.MultiheadAttention in_proj_weight
    in_proj_b = rnd(ks[1], (3 * E,))
    out_w = rnd(ks[2], (E, E))                # out_proj.weight (out, in)
    out_b = rnd(ks[3], (E,))
    ffn_w1 = rnd(ks[4], (2 * E, E))           # Linear(E, 2E).weight (out, in)
    ffn_b1 = rnd(ks[5], (2 * E,))
    ffn_w2 = rnd(ks[6], (E, 2 * E))           # Linear(2E, E).weight (out, in)
    ffn_b2 = rnd(ks[7], (E,))
    g1 = jnp.ones((E,), dtype); be1 = jnp.zeros((E,), dtype)
    g2 = jnp.ones((E,), dtype); be2 = jnp.zeros((E,), dtype)

    return {
        # Matmul weights transposed to (in, out) so the kernel does x @ W and
        # stored in HBM as bf16 (MXU-native on v5e/v6e/v7x).
        # Columns 0:E of wqkv are Q, E:2E are K, 2E:3E are V.
        "wqkv": in_proj_w.T.astype(mxu_dtype),        # (E, 3E)
        "bqkv": in_proj_b.reshape(1, 3 * E),          # (1, 3E) f32
        "wo":   out_w.T.astype(mxu_dtype),            # (E, E)
        "w1":   ffn_w1.T.astype(mxu_dtype),           # (E, 2E)
        "bf1":  ffn_b1.reshape(1, 2 * E),             # (1, 2E) f32
        "w2":   ffn_w2.T.astype(mxu_dtype),           # (2E, E)
        # small per-feature f32 vectors stacked into one slab (one DMA ref):
        "vecs": jnp.stack([out_b, g1, be1, ffn_b2, g2, be2], axis=0),  # (6, E)
    }


def _vmem_capacity_bytes():
    """Per-core VMEM capacity; conservative (v7x) fallback if unavailable."""
    try:
        return int(pltpu.get_tpu_info().vmem_capacity_bytes)
    except Exception:
        return 64 * 1024 * 1024


def _pick_block_batch(B, S, E, itemsize, vmem_cap, weight_bytes):
    """Largest divisor BB of B such that:
      * 4 x (BB*S*E*itemsize) [in + out, double-buffered] plus resident
        weights fits in ~60% of per-core VMEM (headroom for scratch/spills),
      * grid = B//BB stays >= 2 when B allows (feed both v7x TensorCores)."""
    budget = int(0.6 * vmem_cap) - 2 * weight_bytes
    best = 1
    for bb in range(1, B + 1):
        if B % bb:
            continue
        if 4 * bb * S * E * itemsize > budget:
            continue
        if B >= 2 and B // bb < 2:
            continue
        best = bb
    return best


def subcarrier_attention(x, params, num_heads=4, block_batch=None):
    B, S, E = x.shape
    weights = [params[name] for name in PARAM_ORDER]
    weight_bytes = sum(int(w.size) * w.dtype.itemsize for w in weights)
    vmem_cap = _vmem_capacity_bytes()

    BB = block_batch if block_batch is not None else _pick_block_batch(
        B, S, E, x.dtype.itemsize, vmem_cap, weight_bytes)
    assert B % BB == 0, "block_batch must divide the batch size"
    grid_b = B // BB
    R = BB * S

    # 2-D view (free, contiguous): kernel works directly on (R, E) rows.
    x2 = x.reshape(B * S, E)

    io_spec = pl.BlockSpec((R, E), lambda b: (b, 0))
    # Weight index_maps are constant -> blocks stay resident across grid steps.
    w_specs = [pl.BlockSpec(w.shape, lambda b: (0, 0)) for w in weights]

    # Explicit VMEM budget: double-buffered in/out blocks + weights + slack,
    # at least the usual 32 MiB scoped default, never above ~90% of physical.
    block_bytes = R * E * x.dtype.itemsize
    needed = 4 * block_bytes + 2 * weight_bytes + (4 << 20)
    vmem_limit = min(int(0.9 * vmem_cap), max(needed, 32 << 20))

    out2 = pl.pallas_call(
        functools.partial(subcarrier_attention_kernel,
                          num_heads=num_heads, seq_len=S),
        out_shape=jax.ShapeDtypeStruct((B * S, E), x.dtype),
        grid_spec=pltpu.PrefetchScalarGridSpec(
            num_scalar_prefetch=0,
            grid=(grid_b,),
            in_specs=[io_spec] + w_specs,
            out_specs=io_spec,
        ),
        compiler_params=pltpu.CompilerParams(
            dimension_semantics=("parallel",),
            vmem_limit_bytes=vmem_limit,
        ),
    )(x2, *weights)
    return out2.reshape(B, S, E)


def reference_forward(x, P, num_heads=4):
    """Pure-JAX f32 reference with identical semantics (for validation)."""
    B, S, E = x.shape
    Dh = E // num_heads
    f32 = jnp.float32
    wqkv = P["wqkv"].astype(f32); wo = P["wo"].astype(f32)
    w1 = P["w1"].astype(f32); w2 = P["w2"].astype(f32)

    qkv = x @ wqkv + P["bqkv"][0]
    q, k, v = qkv[..., :E], qkv[..., E:2 * E], qkv[..., 2 * E:]

    def split_heads(t):
        return t.reshape(B, S, num_heads, Dh).transpose(0, 2, 1, 3)

    q, k, v = split_heads(q), split_heads(k), split_heads(v)
    s = jnp.einsum("bhqd,bhkd->bhqk", q, k) / math.sqrt(Dh)
    p = jax.nn.softmax(s, axis=-1)
    o = jnp.einsum("bhqk,bhkd->bhqd", p, v).transpose(0, 2, 1, 3).reshape(B, S, E)
    o = o @ wo + P["vecs"][0]

    x1 = _layer_norm(x + o, P["vecs"][1], P["vecs"][2])
    h = _gelu_exact(x1 @ w1 + P["bf1"][0])
    h = h @ w2 + P["vecs"][3]
    return _layer_norm(x1 + h, P["vecs"][4], P["vecs"][5])


if __name__ == "__main__":
    B, S, E, H = 2, 8, 32, 4   # batch, subcarriers (seq), embed_dim, num_heads

    key = jax.random.PRNGKey(0)
    kx, kp = jax.random.split(key)
    x = jax.random.normal(kx, (B, S, E), jnp.float32)
    params = init_params(kp, E, num_heads=H)

    out = subcarrier_attention(x, params, num_heads=H)
    out = jax.block_until_ready(out)

    ref = reference_forward(x, params, num_heads=H)
    assert out.shape == (B, S, E)
    # bf16 MXU operands + approx-reciprocal softmax are deliberate
    # speed/precision trade-offs (per review); reference stays f32, so the
    # tolerance is loosened explicitly rather than silently.
    err = float(jnp.max(jnp.abs(out - ref)))
    assert jnp.allclose(out, ref, atol=1e-2, rtol=1e-2), f"max abs err {err}"

    print("KERNEL_OK")
</pallas_src>

<mosaic_0001>
module attributes {stable_mosaic.version = 11 : i64} {
  func.func @subcarrier_attention_kernel(%arg0: i32, %arg1: memref<8x32xf32, #tpu.memory_space<vmem>>, %arg2: memref<32x96xbf16, #tpu.memory_space<vmem>>, %arg3: memref<1x96xf32, #tpu.memory_space<vmem>>, %arg4: memref<32x32xbf16, #tpu.memory_space<vmem>>, %arg5: memref<32x64xbf16, #tpu.memory_space<vmem>>, %arg6: memref<1x64xf32, #tpu.memory_space<vmem>>, %arg7: memref<64x32xbf16, #tpu.memory_space<vmem>>, %arg8: memref<6x32xf32, #tpu.memory_space<vmem>>, %arg9: memref<8x32xf32, #tpu.memory_space<vmem>>) attributes {dimension_semantics = [#tpu.dimension_semantics<parallel>], iteration_bounds = array<i64: 2>, scalar_prefetch = 0 : i64, scratch_operands = 0 : i64, tpu.core_type = #tpu.core_type<tc>, window_params = [{transform_indices = @transform_0, window_bounds = array<i64: 8, 32>}, {pipeline_mode = #tpu.pipeline_mode<synchronous>, transform_indices = @transform_1, window_bounds = array<i64: 32, 96>}, {pipeline_mode = #tpu.pipeline_mode<synchronous>, transform_indices = @transform_2, window_bounds = array<i64: 1, 96>}, {pipeline_mode = #tpu.pipeline_mode<synchronous>, transform_indices = @transform_3, window_bounds = array<i64: 32, 32>}, {pipeline_mode = #tpu.pipeline_mode<synchronous>, transform_indices = @transform_4, window_bounds = array<i64: 32, 64>}, {pipeline_mode = #tpu.pipeline_mode<synchronous>, transform_indices = @transform_5, window_bounds = array<i64: 1, 64>}, {pipeline_mode = #tpu.pipeline_mode<synchronous>, transform_indices = @transform_6, window_bounds = array<i64: 64, 32>}, {pipeline_mode = #tpu.pipeline_mode<synchronous>, transform_indices = @transform_7, window_bounds = array<i64: 6, 32>}, {transform_indices = @transform_8, window_bounds = array<i64: 8, 32>}]} {
    %c0 = arith.constant 0 : index
    %c0_0 = arith.constant 0 : index
    %0 = vector.load %arg1[%c0, %c0_0] : memref<8x32xf32, #tpu.memory_space<vmem>>, vector<8x32xf32>
    %c0_1 = arith.constant 0 : index
    %c0_2 = arith.constant 0 : index
    %1 = vector.load %arg8[%c0_1, %c0_2] : memref<6x32xf32, #tpu.memory_space<vmem>>, vector<1x32xf32>
    %c1 = arith.constant 1 : index
    %c0_3 = arith.constant 0 : index
    %2 = vector.load %arg8[%c1, %c0_3] : memref<6x32xf32, #tpu.memory_space<vmem>>, vector<1x32xf32>
    %c2 = arith.constant 2 : index
    %c0_4 = arith.constant 0 : index
    %3 = vector.load %arg8[%c2, %c0_4] : memref<6x32xf32, #tpu.memory_space<vmem>>, vector<1x32xf32>
    %c3 = arith.constant 3 : index
    %c0_5 = arith.constant 0 : index
    %4 = vector.load %arg8[%c3, %c0_5] : memref<6x32xf32, #tpu.memory_space<vmem>>, vector<1x32xf32>
    %c4 = arith.constant 4 : index
    %c0_6 = arith.constant 0 : index
    %5 = vector.load %arg8[%c4, %c0_6] : memref<6x32xf32, #tpu.memory_space<vmem>>, vector<1x32xf32>
    %c5 = arith.constant 5 : index
    %c0_7 = arith.constant 0 : index
    %6 = vector.load %arg8[%c5, %c0_7] : memref<6x32xf32, #tpu.memory_space<vmem>>, vector<1x32xf32>
    %7 = arith.truncf %0 : vector<8x32xf32> to vector<8x32xbf16>
    %c0_8 = arith.constant 0 : index
    %c0_9 = arith.constant 0 : index
    %8 = vector.load %arg2[%c0_8, %c0_9] : memref<32x96xbf16, #tpu.memory_space<vmem>>, vector<32x96xbf16>
    %cst = arith.constant dense<0.000000e+00> : vector<8x96xf32>
    %9 = tpu.matmul %7, %8, %cst {dimension_numbers = #tpu.dot_dimension_numbers<[1], [0], [0], [1], [0, 0, 1, 1], [], []>} : vector<8x32xbf16>, vector<32x96xbf16>, vector<8x96xf32> -> vector<8x96xf32>
    %c0_10 = arith.constant 0 : index
    %c0_11 = arith.constant 0 : index
    %10 = vector.load %arg3[%c0_10, %c0_11] : memref<1x96xf32, #tpu.memory_space<vmem>>, vector<1x96xf32>
    %11 = vector.broadcast %10 : vector<1x96xf32> to vector<8x96xf32>
    %12 = arith.addf %9, %11 : vector<8x96xf32>
    %13 = vector.extract_strided_slice %12 {offsets = [0, 0], sizes = [8, 8], strides = [1, 1]} : vector<8x96xf32> to vector<8x8xf32>
    %14 = vector.extract_strided_slice %12 {offsets = [0, 32], sizes = [8, 8], strides = [1, 1]} : vector<8x96xf32> to vector<8x8xf32>
    %15 = vector.extract_strided_slice %12 {offsets = [0, 64], sizes = [8, 8], strides = [1, 1]} : vector<8x96xf32> to vector<8x8xf32>
    %cst_12 = arith.constant 0.353553385 : f32
    %16 = vector.broadcast %cst_12 : f32 to vector<8x8xf32>
    %17 = arith.mulf %13, %16 : vector<8x8xf32>
    %18 = vector.shape_cast %17 : vector<8x8xf32> to vector<1x8x8xf32>
    %19 = arith.truncf %18 : vector<1x8x8xf32> to vector<1x8x8xbf16>
    %20 = vector.shape_cast %14 : vector<8x8xf32> to vector<1x8x8xf32>
    %21 = arith.truncf %20 : vector<1x8x8xf32> to vector<1x8x8xbf16>
    %22 = vector.shape_cast %15 : vector<8x8xf32> to vector<1x8x8xf32>
    %23 = arith.truncf %22 : vector<1x8x8xf32> to vector<1x8x8xbf16>
    "tpu.trace_start"() <{level = 10 : i32, message = "bqd,bkd->bqk"}> : () -> ()
    %cst_13 = arith.constant dense<0.000000e+00> : vector<1x8x8xf32>
    %24 = tpu.matmul %19, %21, %cst_13 {dimension_numbers = #tpu.dot_dimension_numbers<[2], [2], [1], [1], [0, 0, 0, 1, 1, 1], [0], [0]>} : vector<1x8x8xbf16>, vector<1x8x8xbf16>, vector<1x8x8xf32> -> vector<1x8x8xf32>
    "tpu.trace_stop"() : () -> ()
    %cst_14 = arith.constant dense<0xFF800000> : vector<1x8xf32>
    %25 = vector.multi_reduction <maximumf>, %24, %cst_14 [2] : vector<1x8x8xf32> to vector<1x8xf32>
    %26 = vector.shape_cast %25 : vector<1x8xf32> to vector<1x8x1xf32>
    %27 = vector.broadcast %26 : vector<1x8x1xf32> to vector<1x8x8xf32>
    %28 = arith.subf %24, %27 : vector<1x8x8xf32>
    %29 = math.exp %28 : vector<1x8x8xf32>
    %cst_15 = arith.constant dense<0.000000e+00> : vector<1x8xf32>
    %30 = vector.multi_reduction <add>, %29, %cst_15 [2] : vector<1x8x8xf32> to vector<1x8xf32>
    %31 = vector.shape_cast %30 : vector<1x8xf32> to vector<1x8x1xf32>
    %32 = tpu.reciprocal %31 {approx = true} : vector<1x8x1xf32> -> vector<1x8x1xf32>
    %33 = vector.broadcast %32 : vector<1x8x1xf32> to vector<1x8x8xf32>
    %34 = arith.mulf %29, %33 : vector<1x8x8xf32>
    %35 = arith.truncf %34 : vector<1x8x8xf32> to vector<1x8x8xbf16>
    "tpu.trace_start"() <{level = 10 : i32, message = "bqk,bkd->bqd"}> : () -> ()
    %cst_16 = arith.constant dense<0.000000e+00> : vector<1x8x8xf32>
    %36 = tpu.matmul %35, %23, %cst_16 {dimension_numbers = #tpu.dot_dimension_numbers<[2], [1], [1], [2], [0, 0, 0, 1, 1, 2], [0], [0]>} : vector<1x8x8xbf16>, vector<1x8x8xbf16>, vector<1x8x8xf32> -> vector<1x8x8xf32>
    "tpu.trace_stop"() : () -> ()
    %37 = vector.shape_cast %36 : vector<1x8x8xf32> to vector<8x8xf32>
    %38 = vector.extract_strided_slice %12 {offsets = [0, 8], sizes = [8, 8], strides = [1, 1]} : vector<8x96xf32> to vector<8x8xf32>
    %39 = vector.extract_strided_slice %12 {offsets = [0, 40], sizes = [8, 8], strides = [1, 1]} : vector<8x96xf32> to vector<8x8xf32>
    %40 = vector.extract_strided_slice %12 {offsets = [0, 72], sizes = [8, 8], strides = [1, 1]} : vector<8x96xf32> to vector<8x8xf32>
    %cst_17 = arith.constant 0.353553385 : f32
    %41 = vector.broadcast %cst_17 : f32 to vector<8x8xf32>
    %42 = arith.mulf %38, %41 : vector<8x8xf32>
    %43 = vector.shape_cast %42 : vector<8x8xf32> to vector<1x8x8xf32>
    %44 = arith.truncf %43 : vector<1x8x8xf32> to vector<1x8x8xbf16>
    %45 = vector.shape_cast %39 : vector<8x8xf32> to vector<1x8x8xf32>
    %46 = arith.truncf %45 : vector<1x8x8xf32> to vector<1x8x8xbf16>
    %47 = vector.shape_cast %40 : vector<8x8xf32> to vector<1x8x8xf32>
    %48 = arith.truncf %47 : vector<1x8x8xf32> to vector<1x8x8xbf16>
    "tpu.trace_start"() <{level = 10 : i32, message = "bqd,bkd->bqk"}> : () -> ()
    %cst_18 = arith.constant dense<0.000000e+00> : vector<1x8x8xf32>
    %49 = tpu.matmul %44, %46, %cst_18 {dimension_numbers = #tpu.dot_dimension_numbers<[2], [2], [1], [1], [0, 0, 0, 1, 1, 1], [0], [0]>} : vector<1x8x8xbf16>, vector<1x8x8xbf16>, vector<1x8x8xf32> -> vector<1x8x8xf32>
    "tpu.trace_stop"() : () -> ()
    %cst_19 = arith.constant dense<0xFF800000> : vector<1x8xf32>
    %50 = vector.multi_reduction <maximumf>, %49, %cst_19 [2] : vector<1x8x8xf32> to vector<1x8xf32>
    %51 = vector.shape_cast %50 : vector<1x8xf32> to vector<1x8x1xf32>
    %52 = vector.broadcast %51 : vector<1x8x1xf32> to vector<1x8x8xf32>
    %53 = arith.subf %49, %52 : vector<1x8x8xf32>
    %54 = math.exp %53 : vector<1x8x8xf32>
    %cst_20 = arith.constant dense<0.000000e+00> : vector<1x8xf32>
    %55 = vector.multi_reduction <add>, %54, %cst_20 [2] : vector<1x8x8xf32> to vector<1x8xf32>
    %56 = vector.shape_cast %55 : vector<1x8xf32> to vector<1x8x1xf32>
    %57 = tpu.reciprocal %56 {approx = true} : vector<1x8x1xf32> -> vector<1x8x1xf32>
    %58 = vector.broadcast %57 : vector<1x8x1xf32> to vector<1x8x8xf32>
    %59 = arith.mulf %54, %58 : vector<1x8x8xf32>
    %60 = arith.truncf %59 : vector<1x8x8xf32> to vector<1x8x8xbf16>
    "tpu.trace_start"() <{level = 10 : i32, message = "bqk,bkd->bqd"}> : () -> ()
    %cst_21 = arith.constant dense<0.000000e+00> : vector<1x8x8xf32>
    %61 = tpu.matmul %60, %48, %cst_21 {dimension_numbers = #tpu.dot_dimension_numbers<[2], [1], [1], [2], [0, 0, 0, 1, 1, 2], [0], [0]>} : vector<1x8x8xbf16>, vector<1x8x8xbf16>, vector<1x8x8xf32> -> vector<1x8x8xf32>
    "tpu.trace_stop"() : () -> ()
    %62 = vector.shape_cast %61 : vector<1x8x8xf32> to vector<8x8xf32>
    %63 = vector.extract_strided_slice %12 {offsets = [0, 16], sizes = [8, 8], strides = [1, 1]} : vector<8x96xf32> to vector<8x8xf32>
    %64 = vector.extract_strided_slice %12 {offsets = [0, 48], sizes = [8, 8], strides = [1, 1]} : vector<8x96xf32> to vector<8x8xf32>
    %65 = vector.extract_strided_slice %12 {offsets = [0, 80], sizes = [8, 8], strides = [1, 1]} : vector<8x96xf32> to vector<8x8xf32>
    %cst_22 = arith.constant 0.353553385 : f32
    %66 = vector.broadcast %cst_22 : f32 to vector<8x8xf32>
    %67 = arith.mulf %63, %66 : vector<8x8xf32>
    %68 = vector.shape_cast %67 : vector<8x8xf32> to vector<1x8x8xf32>
    %69 = arith.truncf %68 : vector<1x8x8xf32> to vector<1x8x8xbf16>
    %70 = vector.shape_cast %64 : vector<8x8xf32> to vector<1x8x8xf32>
    %71 = arith.truncf %70 : vector<1x8x8xf32> to vector<1x8x8xbf16>
    %72 = vector.shape_cast %65 : vector<8x8xf32> to vector<1x8x8xf32>
    %73 = arith.truncf %72 : vector<1x8x8xf32> to vector<1x8x8xbf16>
    "tpu.trace_start"() <{level = 10 : i32, message = "bqd,bkd->bqk"}> : () -> ()
    %cst_23 = arith.constant dense<0.000000e+00> : vector<1x8x8xf32>
    %74 = tpu.matmul %69, %71, %cst_23 {dimension_numbers = #tpu.dot_dimension_numbers<[2], [2], [1], [1], [0, 0, 0, 1, 1, 1], [0], [0]>} : vector<1x8x8xbf16>, vector<1x8x8xbf16>, vector<1x8x8xf32> -> vector<1x8x8xf32>
    "tpu.trace_stop"() : () -> ()
    %cst_24 = arith.constant dense<0xFF800000> : vector<1x8xf32>
    %75 = vector.multi_reduction <maximumf>, %74, %cst_24 [2] : vector<1x8x8xf32> to vector<1x8xf32>
    %76 = vector.shape_cast %75 : vector<1x8xf32> to vector<1x8x1xf32>
    %77 = vector.broadcast %76 : vector<1x8x1xf32> to vector<1x8x8xf32>
    %78 = arith.subf %74, %77 : vector<1x8x8xf32>
    %79 = math.exp %78 : vector<1x8x8xf32>
    %cst_25 = arith.constant dense<0.000000e+00> : vector<1x8xf32>
    %80 = vector.multi_reduction <add>, %79, %cst_25 [2] : vector<1x8x8xf32> to vector<1x8xf32>
    %81 = vector.shape_cast %80 : vector<1x8xf32> to vector<1x8x1xf32>
    %82 = tpu.reciprocal %81 {approx = true} : vector<1x8x1xf32> -> vector<1x8x1xf32>
    %83 = vector.broadcast %82 : vector<1x8x1xf32> to vector<1x8x8xf32>
    %84 = arith.mulf %79, %83 : vector<1x8x8xf32>
    %85 = arith.truncf %84 : vector<1x8x8xf32> to vector<1x8x8xbf16>
    "tpu.trace_start"() <{level = 10 : i32, message = "bqk,bkd->bqd"}> : () -> ()
    %cst_26 = arith.constant dense<0.000000e+00> : vector<1x8x8xf32>
    %86 = tpu.matmul %85, %73, %cst_26 {dimension_numbers = #tpu.dot_dimension_numbers<[2], [1], [1], [2], [0, 0, 0, 1, 1, 2], [0], [0]>} : vector<1x8x8xbf16>, vector<1x8x8xbf16>, vector<1x8x8xf32> -> vector<1x8x8xf32>
    "tpu.trace_stop"() : () -> ()
    %87 = vector.shape_cast %86 : vector<1x8x8xf32> to vector<8x8xf32>
    %88 = vector.extract_strided_slice %12 {offsets = [0, 24], sizes = [8, 8], strides = [1, 1]} : vector<8x96xf32> to vector<8x8xf32>
    %89 = vector.extract_strided_slice %12 {offsets = [0, 56], sizes = [8, 8], strides = [1, 1]} : vector<8x96xf32> to vector<8x8xf32>
    %90 = vector.extract_strided_slice %12 {offsets = [0, 88], sizes = [8, 8], strides = [1, 1]} : vector<8x96xf32> to vector<8x8xf32>
    %cst_27 = arith.constant 0.353553385 : f32
    %91 = vector.broadcast %cst_27 : f32 to vector<8x8xf32>
    %92 = arith.mulf %88, %91 : vector<8x8xf32>
    %93 = vector.shape_cast %92 : vector<8x8xf32> to vector<1x8x8xf32>
    %94 = arith.truncf %93 : vector<1x8x8xf32> to vector<1x8x8xbf16>
    %95 = vector.shape_cast %89 : vector<8x8xf32> to vector<1x8x8xf32>
    %96 = arith.truncf %95 : vector<1x8x8xf32> to vector<1x8x8xbf16>
    %97 = vector.shape_cast %90 : vector<8x8xf32> to vector<1x8x8xf32>
    %98 = arith.truncf %97 : vector<1x8x8xf32> to vector<1x8x8xbf16>
    "tpu.trace_start"() <{level = 10 : i32, message = "bqd,bkd->bqk"}> : () -> ()
    %cst_28 = arith.constant dense<0.000000e+00> : vector<1x8x8xf32>
    %99 = tpu.matmul %94, %96, %cst_28 {dimension_numbers = #tpu.dot_dimension_numbers<[2], [2], [1], [1], [0, 0, 0, 1, 1, 1], [0], [0]>} : vector<1x8x8xbf16>, vector<1x8x8xbf16>, vector<1x8x8xf32> -> vector<1x8x8xf32>
    "tpu.trace_stop"() : () -> ()
    %cst_29 = arith.constant dense<0xFF800000> : vector<1x8xf32>
    %100 = vector.multi_reduction <maximumf>, %99, %cst_29 [2] : vector<1x8x8xf32> to vector<1x8xf32>
    %101 = vector.shape_cast %100 : vector<1x8xf32> to vector<1x8x1xf32>
    %102 = vector.broadcast %101 : vector<1x8x1xf32> to vector<1x8x8xf32>
    %103 = arith.subf %99, %102 : vector<1x8x8xf32>
    %104 = math.exp %103 : vector<1x8x8xf32>
    %cst_30 = arith.constant dense<0.000000e+00> : vector<1x8xf32>
    %105 = vector.multi_reduction <add>, %104, %cst_30 [2] : vector<1x8x8xf32> to vector<1x8xf32>
    %106 = vector.shape_cast %105 : vector<1x8xf32> to vector<1x8x1xf32>
    %107 = tpu.reciprocal %106 {approx = true} : vector<1x8x1xf32> -> vector<1x8x1xf32>
    %108 = vector.broadcast %107 : vector<1x8x1xf32> to vector<1x8x8xf32>
    %109 = arith.mulf %104, %108 : vector<1x8x8xf32>
    %110 = arith.truncf %109 : vector<1x8x8xf32> to vector<1x8x8xbf16>
    "tpu.trace_start"() <{level = 10 : i32, message = "bqk,bkd->bqd"}> : () -> ()
    %cst_31 = arith.constant dense<0.000000e+00> : vector<1x8x8xf32>
    %111 = tpu.matmul %110, %98, %cst_31 {dimension_numbers = #tpu.dot_dimension_numbers<[2], [1], [1], [2], [0, 0, 0, 1, 1, 2], [0], [0]>} : vector<1x8x8xbf16>, vector<1x8x8xbf16>, vector<1x8x8xf32> -> vector<1x8x8xf32>
    "tpu.trace_stop"() : () -> ()
    %112 = vector.shape_cast %111 : vector<1x8x8xf32> to vector<8x8xf32>
    %113 = tpu.concatenate %37, %62, %87, %112 in 1 : vector<8x8xf32>, vector<8x8xf32>, vector<8x8xf32>, vector<8x8xf32> -> vector<8x32xf32>
    %114 = arith.truncf %113 : vector<8x32xf32> to vector<8x32xbf16>
    %c0_32 = arith.constant 0 : index
    %c0_33 = arith.constant 0 : index
    %115 = vector.load %arg4[%c0_32, %c0_33] : memref<32x32xbf16, #tpu.memory_space<vmem>>, vector<32x32xbf16>
    %cst_34 = arith.constant dense<0.000000e+00> : vector<8x32xf32>
    %116 = tpu.matmul %114, %115, %cst_34 {dimension_numbers = #tpu.dot_dimension_numbers<[1], [0], [0], [1], [0, 0, 1, 1], [], []>} : vector<8x32xbf16>, vector<32x32xbf16>, vector<8x32xf32> -> vector<8x32xf32>
    %117 = vector.broadcast %1 : vector<1x32xf32> to vector<8x32xf32>
    %118 = arith.addf %116, %117 : vector<8x32xf32>
    %119 = arith.addf %0, %118 : vector<8x32xf32>
    %cst_35 = arith.constant dense<0.000000e+00> : vector<8xf32>
    %120 = vector.multi_reduction <add>, %119, %cst_35 [1] : vector<8x32xf32> to vector<8xf32>
    %121 = vector.shape_cast %120 : vector<8xf32> to vector<8x1xf32>
    %cst_36 = arith.constant 3.200000e+01 : f32
    %122 = vector.broadcast %cst_36 : f32 to vector<8x1xf32>
    %123 = arith.divf %121, %122 : vector<8x1xf32>
    %124 = vector.broadcast %123 : vector<8x1xf32> to vector<8x32xf32>
    %125 = arith.subf %119, %124 : vector<8x32xf32>
    %126 = arith.mulf %125, %125 : vector<8x32xf32>
    %cst_37 = arith.constant dense<0.000000e+00> : vector<8xf32>
    %127 = vector.multi_reduction <add>, %126, %cst_37 [1] : vector<8x32xf32> to vector<8xf32>
    %128 = vector.shape_cast %127 : vector<8xf32> to vector<8x1xf32>
    %cst_38 = arith.constant 3.200000e+01 : f32
    %129 = vector.broadcast %cst_38 : f32 to vector<8x1xf32>
    %130 = arith.divf %128, %129 : vector<8x1xf32>
    %131 = vector.broadcast %123 : vector<8x1xf32> to vector<8x32xf32>
    %132 = arith.subf %119, %131 : vector<8x32xf32>
    %cst_39 = arith.constant 9.99999974E-6 : f32
    %133 = vector.broadcast %cst_39 : f32 to vector<8x1xf32>
    %134 = arith.addf %130, %133 : vector<8x1xf32>
    %135 = math.rsqrt %134 : vector<8x1xf32>
    %136 = vector.broadcast %135 : vector<8x1xf32> to vector<8x32xf32>
    %137 = arith.mulf %132, %136 : vector<8x32xf32>
    %138 = vector.broadcast %2 : vector<1x32xf32> to vector<8x32xf32>
    %139 = arith.mulf %137, %138 : vector<8x32xf32>
    %140 = vector.broadcast %3 : vector<1x32xf32> to vector<8x32xf32>
    %141 = arith.addf %139, %140 : vector<8x32xf32>
    %142 = arith.truncf %141 : vector<8x32xf32> to vector<8x32xbf16>
    %c0_40 = arith.constant 0 : index
    %c0_41 = arith.constant 0 : index
    %143 = vector.load %arg5[%c0_40, %c0_41] : memref<32x64xbf16, #tpu.memory_space<vmem>>, vector<32x64xbf16>
    %cst_42 = arith.constant dense<0.000000e+00> : vector<8x64xf32>
    %144 = tpu.matmul %142, %143, %cst_42 {dimension_numbers = #tpu.dot_dimension_numbers<[1], [0], [0], [1], [0, 0, 1, 1], [], []>} : vector<8x32xbf16>, vector<32x64xbf16>, vector<8x64xf32> -> vector<8x64xf32>
    %c0_43 = arith.constant 0 : index
    %c0_44 = arith.constant 0 : index
    %145 = vector.load %arg6[%c0_43, %c0_44] : memref<1x64xf32, #tpu.memory_space<vmem>>, vector<1x64xf32>
    %146 = vector.broadcast %145 : vector<1x64xf32> to vector<8x64xf32>
    %147 = arith.addf %144, %146 : vector<8x64xf32>
    %cst_45 = arith.constant 5.000000e-01 : f32
    %148 = vector.broadcast %cst_45 : f32 to vector<8x64xf32>
    %149 = arith.mulf %148, %147 : vector<8x64xf32>
    %cst_46 = arith.constant 0.707106769 : f32
    %150 = vector.broadcast %cst_46 : f32 to vector<8x64xf32>
    %151 = arith.mulf %147, %150 : vector<8x64xf32>
    %152 = math.erf %151 : vector<8x64xf32>
    %cst_47 = arith.constant 1.000000e+00 : f32
    %153 = vector.broadcast %cst_47 : f32 to vector<8x64xf32>
    %154 = arith.addf %153, %152 : vector<8x64xf32>
    %155 = arith.mulf %149, %154 : vector<8x64xf32>
    %156 = arith.truncf %155 : vector<8x64xf32> to vector<8x64xbf16>
    %c0_48 = arith.constant 0 : index
    %c0_49 = arith.constant 0 : index
    %157 = vector.load %arg7[%c0_48, %c0_49] : memref<64x32xbf16, #tpu.memory_space<vmem>>, vector<64x32xbf16>
    %cst_50 = arith.constant dense<0.000000e+00> : vector<8x32xf32>
    %158 = tpu.matmul %156, %157, %cst_50 {dimension_numbers = #tpu.dot_dimension_numbers<[1], [0], [0], [1], [0, 0, 1, 1], [], []>} : vector<8x64xbf16>, vector<64x32xbf16>, vector<8x32xf32> -> vector<8x32xf32>
    %159 = vector.broadcast %4 : vector<1x32xf32> to vector<8x32xf32>
    %160 = arith.addf %158, %159 : vector<8x32xf32>
    %161 = arith.addf %141, %160 : vector<8x32xf32>
    %cst_51 = arith.constant dense<0.000000e+00> : vector<8xf32>
    %162 = vector.multi_reduction <add>, %161, %cst_51 [1] : vector<8x32xf32> to vector<8xf32>
    %163 = vector.shape_cast %162 : vector<8xf32> to vector<8x1xf32>
    %cst_52 = arith.constant 3.200000e+01 : f32
    %164 = vector.broadcast %cst_52 : f32 to vector<8x1xf32>
    %165 = arith.divf %163, %164 : vector<8x1xf32>
    %166 = vector.broadcast %165 : vector<8x1xf32> to vector<8x32xf32>
    %167 = arith.subf %161, %166 : vector<8x32xf32>
    %168 = arith.mulf %167, %167 : vector<8x32xf32>
    %cst_53 = arith.constant dense<0.000000e+00> : vector<8xf32>
    %169 = vector.multi_reduction <add>, %168, %cst_53 [1] : vector<8x32xf32> to vector<8xf32>
    %170 = vector.shape_cast %169 : vector<8xf32> to vector<8x1xf32>
    %cst_54 = arith.constant 3.200000e+01 : f32
    %171 = vector.broadcast %cst_54 : f32 to vector<8x1xf32>
    %172 = arith.divf %170, %171 : vector<8x1xf32>
    %173 = vector.broadcast %165 : vector<8x1xf32> to vector<8x32xf32>
    %174 = arith.subf %161, %173 : vector<8x32xf32>
    %cst_55 = arith.constant 9.99999974E-6 : f32
    %175 = vector.broadcast %cst_55 : f32 to vector<8x1xf32>
    %176 = arith.addf %172, %175 : vector<8x1xf32>
    %177 = math.rsqrt %176 : vector<8x1xf32>
    %178 = vector.broadcast %177 : vector<8x1xf32> to vector<8x32xf32>
    %179 = arith.mulf %174, %178 : vector<8x32xf32>
    %180 = vector.broadcast %5 : vector<1x32xf32> to vector<8x32xf32>
    %181 = arith.mulf %179, %180 : vector<8x32xf32>
    %182 = vector.broadcast %6 : vector<1x32xf32> to vector<8x32xf32>
    %183 = arith.addf %181, %182 : vector<8x32xf32>
    %c0_56 = arith.constant 0 : index
    %c0_57 = arith.constant 0 : index
    %184 = vector.load %arg9[%c0_56, %c0_57] : memref<8x32xf32, #tpu.memory_space<vmem>>, vector<8x32xf32>
    tpu.vector_store %arg9[%c0_56, %c0_57], %183 {strides = array<i32>} : memref<8x32xf32, #tpu.memory_space<vmem>>, vector<8x32xf32>,
    return
  }
  func.func @transform_0(%arg0: i32) -> (i32, i32) {
    %c0_i32 = arith.constant 0 : i32
    %c0_i32_0 = arith.constant 0 : i32
    return %arg0, %c0_i32 : i32, i32
  }
  func.func @transform_1(%arg0: i32) -> (i32, i32) {
    %c0_i32 = arith.constant 0 : i32
    %c0_i32_0 = arith.constant 0 : i32
    %c0_i32_1 = arith.constant 0 : i32
    return %c0_i32, %c0_i32_0 : i32, i32
  }
  func.func @transform_2(%arg0: i32) -> (i32, i32) {
    %c0_i32 = arith.constant 0 : i32
    %c0_i32_0 = arith.constant 0 : i32
    %c0_i32_1 = arith.constant 0 : i32
    return %c0_i32, %c0_i32_0 : i32, i32
  }
  func.func @transform_3(%arg0: i32) -> (i32, i32) {
    %c0_i32 = arith.constant 0 : i32
    %c0_i32_0 = arith.constant 0 : i32
    %c0_i32_1 = arith.constant 0 : i32
    return %c0_i32, %c0_i32_0 : i32, i32
  }
  func.func @transform_4(%arg0: i32) -> (i32, i32) {
    %c0_i32 = arith.constant 0 : i32
    %c0_i32_0 = arith.constant 0 : i32
    %c0_i32_1 = arith.constant 0 : i32
    return %c0_i32, %c0_i32_0 : i32, i32
  }
  func.func @transform_5(%arg0: i32) -> (i32, i32) {
    %c0_i32 = arith.constant 0 : i32
    %c0_i32_0 = arith.constant 0 : i32
    %c0_i32_1 = arith.constant 0 : i32
    return %c0_i32, %c0_i32_0 : i32, i32
  }
  func.func @transform_6(%arg0: i32) -> (i32, i32) {
    %c0_i32 = arith.constant 0 : i32
    %c0_i32_0 = arith.constant 0 : i32
    %c0_i32_1 = arith.constant 0 : i32
    return %c0_i32, %c0_i32_0 : i32, i32
  }
  func.func @transform_7(%arg0: i32) -> (i32, i32) {
    %c0_i32 = arith.constant 0 : i32
    %c0_i32_0 = arith.constant 0 : i32
    %c0_i32_1 = arith.constant 0 : i32
    return %c0_i32, %c0_i32_0 : i32, i32
  }
  func.func @transform_8(%arg0: i32) -> (i32, i32) {
    %c0_i32 = arith.constant 0 : i32
    %c0_i32_0 = arith.constant 0 : i32
    return %arg0, %c0_i32 : i32, i32
  }
}

</mosaic_0001>

<bundles_post_ra>
// kernel: tpu_custom_call.1
= control target key start
LH: loop header
LB: loop body
LE: loop exit
PB: predicated region body
PF: predicated region fallthrough
CT: control target
= control target key end

     0   :  { %13 = vsyncpa [#allocation3], 0  ;;  %s1535_s0 = inlined_call_operand.vmem [shape: f32[16,32], index: 0, kind: input, shape index: {}]   ;;  %s1536_s1 = inlined_call_operand.vmem [shape: bf16[32,96], index: 1, kind: input, shape index: {}]   ;;  %s1537_s2 = inlined_call_operand.vmem [shape: f32[1,96], index: 2, kind: input, shape index: {}]   ;;  %s1538_s3 = inlined_call_operand.vmem [shape: bf16[32,32], index: 3, kind: input, shape index: {}]   ;;  %s1539_s4 = inlined_call_operand.hbm [shape: bf16[32,64], index: 4, kind: input, shape index: {}]   ;;  %s1540_s5 = inlined_call_operand.vmem [shape: f32[1,64], index: 5, kind: input, shape index: {}]   ;;  %s1541_s6 = inlined_call_operand.vmem [shape: bf16[64,32], index: 6, kind: input, shape index: {}]   ;;  %s1542_s7 = inlined_call_operand.hbm [shape: f32[6,32], index: 7, kind: input, shape index: {}]   ;;  %s1543_s8 = inlined_call_operand.hbm [shape: f32[16,32], index: 8, kind: output, shape index: {}]  }
   0x1   :  { %14 = vsyncpa [#allocation6], 0 }
   0x2   :  { %15 = vsyncpa [#allocation4], 0 }
   0x3   :  { %17 = vsyncpa [#allocation4 + $0x1], 0  ;;  %s1336_s27 = smov 0   ;;  %s1338_s28 = smov 0  }
   0x4   :  { %s1340_s29 = smov 0   ;;  %s1342_s30 = smov 0  }
   0x5 LB: > { %s1357_s9 = sadd.s32 4294967295, %s1270_s30   ;;  %s954_s10 = sadd.s32 4294967294, %s1270_s30   ;;  %s1270_s30 = sphi %s1342_s30, %s1550_s30   ;;  %s1266_s29 = sphi %s1340_s29, %s1549_s29   ;;  %s1262_s28 = sphi %s1338_s28, %s1548_s28   ;;  %s1258_s27 = sphi %s1336_s27, %s1547_s27  }
   0x6   : > { %s1361_s11 = sadd.s32 1, %s1270_s30   ;;  %s203_s12 = sadd.s32 1, %s1266_s29 }
   0x7   : > { %s200_s13 = ssub.s32 %s1270_s30, %s1361_s11  ;;  %p213_p0 = scmp.ne.s32.totalorder %s1266_s29, %s1262_s28 }
   0x8   : > { %p201_p1 = scmp.eq.s32.totalorder %s200_s13, 0  ;;  %p214_p2 = scmp.eq.s32.totalorder %s1357_s9, 1 }
   0x9   : > { %p219_p3 = scmp.ne.s32.totalorder %s1262_s28, %s1258_s27  ;;  %p220_p4 = scmp.eq.s32.totalorder %s954_s10, 1 }
   0xa   : > { %s1372_s14 = scalar_select %p201_p1, %s1266_s29, %s203_s12  }
   0xb   : > { %p1374_p5 = por %p214_p2, %p213_p0  ;;  %p1378_p6 = por %p220_p4, %p219_p3 }
   0xc   : > { %p955_p7 = scmp.ge.s32.totalorder %s1270_s30, 1  ;;  %p227_p8 = scmp.lt.s32.totalorder %s1270_s30, 3 }
   0xd   : > { %p1052_p9 = scmp.eq.s32.totalorder %s1357_s9, 0  ;;  %s247_s20 = sshll.u32 %s1539_s4, 4  ;;  %s248_s20 = int_to_ptr.hbm [resolvable:$true] %s247_s20 }
   0xe   : > { %p1385_p10 = pnand %p955_p7, %p227_p8  ;;  %s1272_s21 = smov [#allocation2]  }
   0xf   : > { %s249_s22 = sshll.u32 %s1272_s21, 4  ;;  %s268_s25 = sshll.u32 %s1542_s7, 4  ;;  %s250_s22 = int_to_ptr.vmem [resolvable:$true] %s249_s22  ;;  %s269_s25 = int_to_ptr.hbm [resolvable:$true] %s268_s25 }
  0x10   : > { %p1041_p11 = pneg %p1385_p10  ;;  %s1273_s26 = smov 64  }
  0x11   : > { %s1274_s10 = smov 4   ;;  %s1275_s12 = smov [#allocation5]  }
  0x12   : > { %p1042_p12 = pnand %p1052_p9, %p1041_p11  ;;  %s270_s13 = sshll.u32 %s1275_s12, 4  ;;  %s271_s13 = int_to_ptr.vmem [resolvable:$true] %s270_s13 }
  0x13   : > { %290 = sbr.rel (%p1385_p10) target bundleno = 1959 (0x7a7), region = 52 }
  0x14   : > { %1044 = dma.hbm_to_vmem [thread:$0]  (!%p1042_p12), %s248_s20, 256, %s250_s22, [#allocation3], %s1273_s26, %s1273_s26, %s1274_s10  }
  0x15   : > { %1047 = dma.hbm_to_vmem [thread:$0]  (!%p1042_p12), %s269_s25, 128, %s271_s13, [#allocation6]  }
  0x18   : > { %1245 = dma.done.wait (%p1052_p9), [#allocation3], 256  }
  0x19   : > { %1247 = vsyncadd (%p1052_p9), [#allocation3], 4294967040 }
  0x1a   : > { %1249 = dma.done.wait (%p1052_p9), [#allocation6], 128  }
  0x1b   : > { %1251 = vsyncadd (%p1052_p9), [#allocation6], 4294967168  ;;  %p329_p13 = scmp.lt.s32.totalorder %s1357_s9, 1  ;;  %v1022_v0 = vld [vmem:[%s1536_s1 + $0x8] sm:$0xff]  ;;  %v1021_v1 = vld [vmem:[%s1536_s1] sm:$0xff]  ;;  %vm362_vm0 = vcmask 261120  }
  0x1c   : > { %372 = vmatpush.bf16.msra.mxu0 %v1022_v0  ;;  %v1108_v4 = vld [vmem:[%s1537_s2] ss:$0 sm:$0xff]  ;;  %s1276_s12 = smov 96   ;;  %s1277_s13 = smov 104   ;;  %vm387_vm1 = vcmask 64512   ;;  %vm424_vm2 = vcmask 1043456  }
  0x1d   : > { %s330_s18 = scalar_select %p329_p13, %s1357_s9, 1  ;;  %vm625_vm3 = vcmask 130048   ;;  %vm627_vm4 = vcmask 195584   ;;  %vm812_vm13 = vcmask 523264  }
  0x1e   : > { %s1280_s20 = smov 80   ;;  %s1281_s17 = smov 72  }
  0x1f   : > { %s963_s19 = sshll.u32 %s330_s18, 3  ;;  %s1278_s18 = smov 120  }
  0x20   : > { %s332_s21 = scalar_lea.vmem %s1535_s0, %s963_s19  ;;  %373 = vmatpush.bf16.msra.mxu0 %v1021_v1  ;;  %s1279_s19 = smov 88  }
  0x21   : > { %v1420_v2 = vld [vmem:[%s332_s21] sm:$0xff]  ;;  %s1282_s21 = smov 112   ;;  %s1283_s22 = smov 64  }
  0x22   : > { %v341_v3 = vpack.c.bf16 %v1420_v2, %v1420_v2  ;;  %s1284_s23 = smov 40   ;;  %s1285_s24 = smov 56  }
  0x23   : > { %s1286_s25 = smov 48   ;;  %s1287_s26 = smov 8  }
  0x24   : > { %972 = vmatmul.msk.bf16.vlgmr.msra.gmra.mxu0 %vm362_vm0, %v341_v3  ;;  %s1288_s10 = smov 16  }
  0xa1   : > { %v375_v5 = vpop.f32.mrf.mxu0 }
  0xa2   : > { %v376_v6 = vadd.f32 %v1108_v4, %v375_v5 }
  0xa4   : > { %v379_v7 = vmul.f32 0.35355338, %v376_v6  ;;  %v381_v8 = vpack.c.bf16 %v376_v6, %v376_v6 }
  0xa6   : > { %v380_v9 = vpack.c.bf16 %v379_v7, %v379_v7  ;;  %v383_v10 = vunpack.c.l.b16 %v381_v8 }
  0xa8   : > { %v1428_v11 = vpack.c.b16 %v383_v10, %v383_v10  ;;  %v442_v12 = vunpack.c.l.b16 %v380_v9 }
  0xa9   : > { %v377_v13 = vpop.f32.mrf.mxu0 }
  0xaa   : > { %385 = vrot.lane.b32.xlu0 %v1428_v11, %s1276_s12  ;;  %v443_v14 = vpack.c.b16 %v442_v12, %v442_v12  ;;  %s1289_s12 = smov 24  }
  0xac   : > { %556 = vrot.lane.b32.xlu2 %v443_v14, %s1277_s13  ;;  %444 = vrot.lane.b32.xlu1 %v443_v14, %s1278_s18  ;;  %s326_s18 = sand.u32 1, %s1262_s28  }
  0xb2   : > { %446 = vrot.lane.b32.xlu0 %v1428_v11, %s1279_s19  ;;  %s962_s19 = sshll.u32 %s326_s18, 3 }
  0xb4   : > { %502 = vrot.lane.b32.xlu2 %v1428_v11, %s1280_s20  ;;  %558 = vrot.lane.b32.xlu1 %v1428_v11, %s1281_s17  ;;  %s1018_s20 = sshll.u32 %s1357_s9, 3  ;;  %s858_s9 = scalar_lea.sflag [#allocation4], %s326_s18 }
  0xba   : > { %500 = vrot.lane.b32.xlu0 %v443_v14, %s1282_s21 }
 0x106   : > { %v557_v15 = vpop.permute.xlu2 %556 }
 0x10e   : > { %v503_v16 = vpop.permute.xlu2 %502 }
 0x10f   : > { %v508_v17 = vsel %vm387_vm1, %v503_v16, 0 }
 0x110   : > { %517 = vmatpush.bf16.xpose.msrb.mxu0 %v508_v17 }
 0x11c   : > { %v386_v18 = vpop.permute.xlu0 %385 }
 0x11d   : > { %v392_v19 = vsel %vm387_vm1, %v386_v18, 0 }
 0x11e   : > { %401 = vmatpush.bf16.xpose.msra.mxu1 %v392_v19  ;;  %v445_v20 = vpop.permute.xlu1 %444 }
 0x124   : > { %v447_v21 = vpop.permute.xlu0 %446 }
 0x125   : > { %973 = vmatmul.msk.bf16.vlgmr.msra.gmra.mxu1 %vm387_vm1, %v380_v9  ;;  %v452_v22 = vsel %vm387_vm1, %v447_v21, 0 }
 0x126   : > { %461 = vmatpush.bf16.xpose.msra.mxu3 %v452_v22  ;;  %v559_v23 = vpop.permute.xlu1 %558 }
 0x127   : > { %v564_v24 = vsel %vm387_vm1, %v559_v23, 0 }
 0x12c   : > { %v501_v25 = vpop.permute.xlu0 %500 }
 0x12d   : > { %975 = vmatmul.msk.bf16.vlgmr.msra.gmra.mxu3 %vm387_vm1, %v445_v20  ;;  %977 = vmatmul.msk.bf16.vlgmr.msrb.gmra.mxu0 %vm387_vm1, %v501_v25 }
 0x12e   : > { %573 = vmatpush.bf16.xpose.msrb.mxu3 %v564_v24 }
 0x13d   : > { %979 = vmatmul.msk.bf16.vlgmr.msrb.gmra.mxu3 %vm387_vm1, %v557_v15 }
 0x1a2   : > { %v403_v26 = vpop.f32.mrf.mxu1 }
 0x1a3   : > { %v407_v27 = vsel %vm387_vm1, %v403_v26, -inf }
 0x1a4   : > { %408 = vmax.xlane.f32.xlu1 %v407_v27  ;;  %v1024_v27 = vld [vmem:[%s1538_s3 + $0x8] sm:$0xff] }
 0x1a5   : > { %656 = vmatpush.bf16.msra.mxu0 %v1024_v27 }
 0x1aa   : > { %v405_v28 = vpop.f32.mrf.mxu1  ;;  %v519_v29 = vpop.f32.mrf.mxu0 }
 0x1ab   : > { %v523_v34 = vsel %vm387_vm1, %v519_v29, -inf  ;;  %v1023_v28 = vld [vmem:[%s1538_s3] sm:$0xff] }
 0x1ac   : > { %657 = vmatpush.bf16.msra.mxu0 %v1023_v28 }
 0x1b0   : > { %v463_v30 = vpop.f32.mrf.mxu3 }
 0x1b1   : > { %v467_v31 = vsel %vm387_vm1, %v463_v30, -inf }
 0x1b2   : > { %v521_v32 = vpop.f32.mrf.mxu0  ;;  %468 = vmax.xlane.f32.xlu2 %v467_v31 }
 0x1b8   : > { %v465_v33 = vpop.f32.mrf.mxu3 }
 0x1ba   : > { %524 = vmax.xlane.f32.xlu2 %v523_v34 }
 0x1c0   : > { %v575_v35 = vpop.f32.mrf.mxu3 }
 0x1c1   : > { %v579_v36 = vsel %vm387_vm1, %v575_v35, -inf }
 0x1c2   : > { %580 = vmax.xlane.f32.xlu0 %v579_v36  ;;  %v1109_v36 = vld [vmem:[#allocation5] ss:$0 sm:$0xff] }
 0x1c8   : > { %v577_v37 = vpop.f32.mrf.mxu3 }
 0x1d2   : > { %419 = vrot.lane.b32.xlu2 %v1428_v11, %s1283_s22  ;;  %s868_s22 = scalar_lea.hbm %s1543_s8, %s1018_s20 }
 0x1da   : > { %591 = vrot.lane.b32.xlu2 %v1428_v11, %s1284_s23  ;;  %s328_s23 = scalar_lea.vmem [#allocation7], %s962_s19  ;;  %s1220_s19 = scalar_lea.hbm %s1543_s8, 16 }
 0x217   : > { %v409_v38 = vpop.xlane.xlu1 %408 }
 0x218   : > { %v410_v39 = vsub.f32 %v403_v26, %v409_v38 }
 0x21a   : > { %v411_v40 = vmul.f32 1.442695, %v410_v39 }
 0x21c   : > { %1116 = vpow2.f32 %v411_v40 }
 0x222   : > { %v1117_v41 = vpop.eup %1116 }
 0x223   : > { %v413_v42 = vsel %vm387_vm1, %v1117_v41, 0.0 }
 0x224   : > { %414 = vadd.xlane.f32.xlu1 %v413_v42  ;;  %v1290_v42 = vmov 32.0  }
 0x225   : > { %v469_v43 = vpop.xlane.xlu2 %468 }
 0x226   : > { %v470_v46 = vsub.f32 %v463_v30, %v469_v43 }
 0x228   : > { %v471_v48 = vmul.f32 1.442695, %v470_v46 }
 0x22d   : > { %v525_v44 = vpop.xlane.xlu2 %524 }
 0x22e   : > { %v526_v45 = vsub.f32 %v519_v29, %v525_v44 }
 0x230   : > { %v527_v47 = vmul.f32 1.442695, %v526_v45 }
 0x232   : > { %1118 = vpow2.f32 %v527_v47 }
 0x233   : > { %1120 = vpow2.f32 %v471_v48 }
 0x235   : > { %v420_v49 = vpop.permute.xlu2 %419  ;;  %v581_v50 = vpop.xlane.xlu0 %580 }
 0x236   : > { %v426_v51 = vsel %vm424_vm2, %v420_v49, 0  ;;  %v582_v53 = vsub.f32 %v575_v35, %v581_v50 }
 0x237   : > { %435 = vmatpush.bf16.msra.mxu2 %v426_v51 }
 0x238   : > { %v1119_v52 = vpop.eup %1118  ;;  %v583_v55 = vmul.f32 1.442695, %v582_v53  ;;  %v1026_v53 = vld [vmem:[#allocation2 + $0x8] sm:$0xff] }
 0x239   : > { %v529_v54 = vsel %vm387_vm1, %v1119_v52, 0.0  ;;  %v1121_v56 = vpop.eup %1120 }
 0x23a   : > { %530 = vadd.xlane.f32.xlu0 %v529_v54  ;;  %1122 = vpow2.f32 %v583_v55  ;;  %v473_v57 = vsel %vm387_vm1, %v1121_v56, 0.0  ;;  %v1025_v54 = vld [vmem:[#allocation2] sm:$0xff] }
 0x23d   : > { %479 = vrot.lane.b32.xlu1 %v1428_v11, %s1285_s24  ;;  %v592_v1 = vpop.permute.xlu2 %591  ;;  %s870_s24 = sshll.u32 %s328_s23, 4  ;;  %s871_s24 = int_to_ptr.vmem [resolvable:$true] %s870_s24 }
 0x23e   : > { %v597_v5 = vsel %vm424_vm2, %v592_v1, 0 }
 0x240   : > { %v1123_v58 = vpop.eup %1122 }
 0x241   : > { %v585_v59 = vsel %vm387_vm1, %v1123_v58, 0.0 }
 0x242   : > { %474 = vadd.xlane.f32.xlu0 %v473_v57 }
 0x24a   : > { %586 = vadd.xlane.f32.xlu0 %v585_v59 }
 0x25e   : > { %535 = vrot.lane.b32.xlu0 %v1428_v11, %s1286_s25  ;;  %s872_s25 = sshll.u32 %s868_s22, 4  ;;  %s873_s25 = int_to_ptr.hbm [resolvable:$true] %s872_s25 }
 0x297   : > { %v415_v60 = vpop.xlane.xlu1 %414 }
 0x298   : > { %1124 = vrcp.f32 %v415_v60 }
 0x29e   : > { %v1125_v61 = vpop.eup %1124 }
 0x29f   : > { %v417_v62 = vmul.f32 %v1125_v61, %v1117_v41 }
 0x2a1   : > { %v418_v63 = vpack.c.bf16 %v417_v62, %v417_v62 }
 0x2a3   : > { %974 = vmatmul.msk.bf16.vlgmr.msra.gmra.mxu2 %vm387_vm1, %v418_v63 }
 0x2ad   : > { %v531_v0 = vpop.xlane.xlu0 %530 }
 0x2af   : > { %v480_v3 = vpop.permute.xlu1 %479 }
 0x2b0   : > { %v485_v4 = vsel %vm424_vm2, %v480_v3, 0  ;;  %v1111_v3 = vld [vmem:[#allocation5 + $0x2] ss:$0 sm:$0xff] }
 0x2b1   : > { %494 = vmatpush.bf16.msrb.mxu2 %v485_v4 }
 0x2b5   : > { %606 = vmatpush.bf16.msra.mxu2 %v597_v5  ;;  %v475_v6 = vpop.xlane.xlu0 %474 }
 0x2b6   : > { %1126 = vrcp.f32 %v475_v6 }
 0x2bc   : > { %v1127_v7 = vpop.eup %1126 }
 0x2bd   : > { %v477_v8 = vmul.f32 %v1127_v7, %v1121_v56  ;;  %v587_v9 = vpop.xlane.xlu0 %586 }
 0x2be   : > { %1128 = vrcp.f32 %v587_v9 }
 0x2bf   : > { %v478_v10 = vpack.c.bf16 %v477_v8, %v477_v8  ;;  %1130 = vrcp.f32 %v531_v0  ;;  %v1110_v0 = vld [vmem:[#allocation5 + $0x1] ss:$0 sm:$0xff]  ;;  %v1112_v8 = vld [vmem:[%s1540_s5] ss:$0 sm:$0xff] }
 0x2c0   : > { %1132 = vrcp.f32 %v1290_v42 }
 0x2c1   : > { %976 = vmatmul.msk.bf16.vlgmr.msrb.gmra.mxu2 %vm387_vm1, %v478_v10 }
 0x2c4   : > { %v1129_v11 = vpop.eup %1128 }
 0x2c5   : > { %v589_v12 = vmul.f32 %v1129_v11, %v1123_v58  ;;  %v1131_v13 = vpop.eup %1130 }
 0x2c6   : > { %v533_v14 = vmul.f32 %v1131_v13, %v1119_v52  ;;  %v1133_v43 = vpop.eup %1132 }
 0x2c7   : > { %v590_v15 = vpack.c.bf16 %v589_v12, %v589_v12  ;;  %v668_v44 = vmul.f32 32.0, %v1133_v43  ;;  %vm672_vm5 = vweird.f32 %v1133_v43 }
 0x2c8   : > { %v534_v18 = vpack.c.bf16 %v533_v14, %v533_v14 }
 0x2c9   : > { %v669_v45 = vsub.f32 1.0, %v668_v44 }
 0x2cb   : > { %v670_v46 = vmul.f32 %v1133_v43, %v669_v45 }
 0x2cd   : > { %v671_v47 = vadd.f32 %v1133_v43, %v670_v46 }
 0x2cf   : > { %v1472_v48 = vsel %vm672_vm5, %v1133_v43, %v671_v47 }
 0x2d0   : > { %v536_v16 = vpop.permute.xlu0 %535 }
 0x2d1   : > { %980 = vmatmul.msk.bf16.vlgmr.msra.gmra.mxu2 %vm387_vm1, %v590_v15  ;;  %v541_v17 = vsel %vm424_vm2, %v536_v16, 0  ;;  %v1030_v15 = vld [vmem:[%s1541_s6 + $0x18] sm:$0xff] }
 0x2d2   : > { %550 = vmatpush.bf16.msrb.mxu1 %v541_v17  ;;  %820 = vmatpush.bf16.msra.mxu3 %v1030_v15  ;;  %v1115_v15 = vld [vmem:[#allocation5 + $0x5] ss:$0 sm:$0xff] }
 0x2d5   : > { %978 = vmatmul.msk.bf16.vlgmr.msrb.gmra.mxu1 %vm387_vm1, %v534_v18 }
 0x2d6   : > { %727 = vmatpush.bf16.msra.mxu1 %v1026_v53 }
 0x2da   : > { %728 = vmatpush.bf16.msra.mxu1 %v1025_v54 }
 0x326   : > { %v437_v19 = vpop.f32.mrf.mxu2 }
 0x32e   : > { %v439_v20 = vpop.f32.mrf.mxu2 }
 0x32f   : > { %v1029_v20 = vld [vmem:[%s1541_s6 + $0x10] sm:$0xff] }
 0x330   : > { %821 = vmatpush.bf16.msra.mxu3 %v1029_v20 }
 0x344   : > { %v496_v21 = vpop.f32.mrf.mxu2 }
 0x345   : > { %613 = vrot.lane.b32.xlu1 %v496_v21, %s1287_s26  ;;  %s1214_s26 = sshra.s32 %s873_s25, 4  ;;  %s1215_s26 = int_to_ptr.hbm [resolvable:$true] %s1214_s26 }
 0x346   : > { %p1221_p3 = scmp.lt.s32.totalorder %s1215_s26, %s1543_s8 }
 0x34c   : > { %v498_v22 = vpop.f32.mrf.mxu2 }
 0x352   : > { %v552_v23 = vpop.f32.mrf.mxu1 }
 0x353   : > { %617 = vrot.lane.b32.xlu2 %v552_v23, %s1288_s10  ;;  %s1216_s10 = scalar_lea.hbm %s1215_s26, 8 }
 0x354   : > { %v608_v24 = vpop.f32.mrf.mxu2  ;;  %p1217_p0 = scmp.ne.s32.totalorder %s1215_s26, %s1216_s10  ;;  %p1222_p4 = scmp.lt.s32.totalorder %s1220_s19, %s1216_s10 }
 0x355   : > { %621 = vrot.lane.b32.xlu1 %v608_v24, %s1289_s12 }
 0x356   : > { %p1218_p1 = pnand %p1217_p0, %p1374_p5  ;;  %p1223_p7 = por %p1222_p4, %p1221_p3 }
 0x358   : > { %p1219_p2 = pneg %p1218_p1 }
 0x35a   : > { %v554_v25 = vpop.f32.mrf.mxu1  ;;  %p1224_p8 = pnand %p1223_p7, %p1219_p2 }
 0x35b   : > { %v1028_v25 = vld [vmem:[%s1541_s6 + $0x8] sm:$0xff] }
 0x35c   : > { %v610_v26 = vpop.f32.mrf.mxu2  ;;  %822 = vmatpush.bf16.msra.mxu3 %v1028_v25 }
 0x3ad   : > { %v618_v31 = vpop.permute.xlu2 %617 }
 0x3b7   : > { %v614_v29 = vpop.permute.xlu1 %613 }
 0x3b8   : > { %v624_v30 = vsel %vm387_vm1, %v437_v19, %v614_v29  ;;  %v1027_v29 = vld [vmem:[%s1541_s6] sm:$0xff] }
 0x3b9   : > { %v626_v33 = vsel %vm625_vm3, %v624_v30, %v618_v31  ;;  %823 = vmatpush.bf16.msra.mxu3 %v1027_v29 }
 0x3c7   : > { %v622_v32 = vpop.permute.xlu1 %621 }
 0x3c8   : > { %v628_v34 = vsel %vm627_vm4, %v626_v33, %v622_v32 }
 0x3c9   : > { %v629_v35 = vpack.c.bf16 %v628_v34, %v628_v34 }
 0x3cb   : > { %989 = vmatmul.msk.bf16.vlgmr.msra.gmra.mxu0 %vm362_vm0, %v629_v35 }
 0x448   : > { %v659_v37 = vpop.f32.mrf.mxu0 }
 0x449   : > { %v660_v38 = vadd.f32 %v1109_v36, %v659_v37 }
 0x44b   : > { %v663_v39 = vadd.f32 %v660_v38, %v1420_v2 }
 0x44d   : > { %v664_v40 = vsel %vm362_vm0, %v663_v39, 0.0 }
 0x44e   : > { %665 = vadd.xlane.f32.xlu2 %v664_v40 }
 0x450   : > { %v661_v41 = vpop.f32.mrf.mxu0 }
 0x4c1   : > { %v666_v49 = vpop.xlane.xlu2 %665 }
 0x4c2   : > { %v674_v50 = vmul.f32 %v1472_v48, %v666_v49 }
 0x4c4   : > { %v675_v51 = vsub.f32 %v663_v39, %v674_v50 }
 0x4c6   : > { %v676_v52 = vmul.f32 %v675_v51, %v675_v51 }
 0x4c8   : > { %v677_v2 = vsel %vm362_vm0, %v676_v52, 0.0 }
 0x4c9   : > { %678 = vadd.xlane.f32.xlu1 %v677_v2 }
 0x53c   : > { %v679_v55 = vpop.xlane.xlu1 %678 }
 0x53d   : > { %v680_v56 = vmul.f32 %v679_v55, %v1472_v48 }
 0x53f   : > { %v681_v57 = vadd.f32 1e-05, %v680_v56  ;;  %v1113_v56 = vld [vmem:[#allocation5 + $0x3] ss:$0 sm:$0xff] }
 0x541   : > { %1134 = vrsqrt.f32 %v681_v57  ;;  %vm688_vm7 = vweird.f32 %v681_v57 }
 0x547   : > { %v1135_v58 = vpop.eup %1134 }
 0x548   : > { %v683_v59 = vmul.f32 %v1135_v58, %v681_v57  ;;  %vm689_vm6 = vweird.f32 %v1135_v58 }
 0x549   : > { %vm690_vm8 = vmor %vm688_vm7, %vm689_vm6 }
 0x54a   : > { %v684_v60 = vmul.f32 %v1135_v58, %v683_v59 }
 0x54c   : > { %v685_v61 = vmul.f32 0.5, %v684_v60 }
 0x54e   : > { %v686_v62 = vsub.f32 1.5, %v685_v61 }
 0x550   : > { %v687_v63 = vmul.f32 %v1135_v58, %v686_v62 }
 0x552   : > { %v691_v1 = vsel %vm690_vm8, %v1135_v58, %v687_v63 }
 0x553   : > { %v692_v4 = vmul.f32 %v691_v1, %v675_v51 }
 0x555   : > { %v694_v5 = vmul.f32 %v1110_v0, %v692_v4 }
 0x557   : > { %v1477_v6 = vadd.f32 %v1111_v3, %v694_v5 }
 0x559   : > { %v697_v7 = vpack.c.bf16 %v1477_v6, %v1477_v6 }
 0x55b   : > { %998 = vmatmul.msk.bf16.vlgmr.msra.gmra.mxu1 %vm362_vm0, %v697_v7 }
 0x5d8   : > { %v730_v9 = vpop.f32.mrf.mxu1 }
 0x5d9   : > { %v731_v10 = vadd.f32 %v1112_v8, %v730_v9 }
 0x5db   : > { %v735_v11 = vmul.f32 0.70710677, %v731_v10  ;;  %v734_v2 = vmul.f32 0.5, %v731_v10 }
 0x5dd   : > { %v736_v12 = vmul.f32 %v735_v11, %v735_v11 }
 0x5df   : > { %v737_v13 = vmin.f32 %v736_v12, 16.0 }
 0x5e0   : > { %v732_v14 = vpop.f32.mrf.mxu1 }
 0x5e1   : > { %v738_v16 = vmul.f32 2.1237322e-06, %v737_v13  ;;  %v749_v17 = vmul.f32 3.8918573e-05, %v737_v13 }
 0x5e3   : > { %v739_v18 = vadd.f32 0.00028619796, %v738_v16  ;;  %v750_v19 = vadd.f32 0.001143296, %v749_v17 }
 0x5e5   : > { %v740_v21 = vmul.f32 %v739_v18, %v737_v13  ;;  %v751_v22 = vmul.f32 %v750_v19, %v737_v13 }
 0x5e7   : > { %v752_v23 = vadd.f32 0.014752088, %v751_v22  ;;  %v741_v24 = vadd.f32 0.0036580483, %v740_v21 }
 0x5e9   : > { %v753_v26 = vmul.f32 %v752_v23, %v737_v13  ;;  %v742_v28 = vmul.f32 %v741_v24, %v737_v13 }
 0x5eb   : > { %v754_v27 = vadd.f32 0.112945676, %v753_v26  ;;  %v743_v32 = vadd.f32 0.05243302, %v742_v28 }
 0x5ed   : > { %v755_v30 = vmul.f32 %v754_v27, %v737_v13  ;;  %v744_v35 = vmul.f32 %v743_v32, %v737_v13 }
 0x5ef   : > { %v756_v31 = vadd.f32 0.4994258, %v755_v30  ;;  %v745_v36 = vadd.f32 0.18741608, %v744_v35 }
 0x5f1   : > { %v757_v33 = vmul.f32 %v756_v31, %v737_v13  ;;  %v746_v38 = vmul.f32 %v745_v36, %v737_v13  ;;  %v1114_v13 = vld [vmem:[#allocation5 + $0x4] ss:$0 sm:$0xff] }
 0x5f3   : > { %v758_v34 = vadd.f32 1.0, %v757_v33  ;;  %v747_v42 = vadd.f32 1.1283791, %v746_v38 }
 0x5f5   : > { %1136 = vrcp.f32 %v758_v34  ;;  %v770_v41 = vand.u32 2147483648, %v758_v34  ;;  %v768_v44 = vand.u32 2147483647, %v758_v34  ;;  %vm764_vm10 = vweird.f32 %v758_v34 }
 0x5f6   : > { %v748_v47 = vmul.f32 %v747_v42, %v735_v11 }
 0x5f7   : > { %v771_v46 = vor.u32 1.1754944e-38, %v770_v41  ;;  %vm769_vm12 = vcmp.eq.f32.partialorder %v768_v44, 8.507059e+37 }
 0x5fb   : > { %v1137_v37 = vpop.eup %1136 }
 0x5fc   : > { %v760_v39 = vmul.f32 %v1137_v37, %v758_v34  ;;  %vm765_vm9 = vweird.f32 %v1137_v37 }
 0x5fd   : > { %vm766_vm11 = vmor %vm764_vm10, %vm765_vm9 }
 0x5fe   : > { %v761_v40 = vsub.f32 1.0, %v760_v39 }
 0x600   : > { %v762_v43 = vmul.f32 %v1137_v37, %v761_v40 }
 0x602   : > { %v763_v45 = vadd.f32 %v1137_v37, %v762_v43 }
 0x604   : > { %v767_v49 = vsel %vm766_vm11, %v1137_v37, %v763_v45 }
 0x605   : > { %v772_v50 = vsel %vm769_vm12, %v771_v46, %v767_v49 }
 0x606   : > { %v773_v51 = vmul.f32 %v772_v50, %v748_v47 }
 0x608   : > { %v999_v52 = vclamps-f32 %v773_v51, 1.0 }
 0x60a   : > { %v776_v53 = vadd.f32 1.0, %v999_v52 }
 0x60c   : > { %v777_v54 = vmul.f32 %v776_v53, %v734_v2 }
 0x60e   : > { %v778_v55 = vpack.c.bf16 %v777_v54, %v777_v54 }
 0x610   : > { %1016 = vmatmul.msk.bf16.vlgmr.msra.gmra.mxu3 %vm812_vm13, %v778_v55 }
 0x693   : > { %v825_v57 = vpop.f32.mrf.mxu3 }
 0x694   : > { %v826_v58 = vadd.f32 %v1113_v56, %v825_v57 }
 0x696   : > { %v829_v59 = vadd.f32 %v826_v58, %v1477_v6 }
 0x698   : > { %v830_v60 = vsel %vm362_vm0, %v829_v59, 0.0 }
 0x699   : > { %831 = vadd.xlane.f32.xlu0 %v830_v60 }
 0x69b   : > { %v827_v61 = vpop.f32.mrf.mxu3 }
 0x70c   : > { %v832_v62 = vpop.xlane.xlu0 %831 }
 0x70d   : > { %v833_v63 = vmul.f32 %v832_v62, %v1472_v48 }
 0x70f   : > { %v834_v0 = vsub.f32 %v829_v59, %v833_v63 }
 0x711   : > { %v835_v1 = vmul.f32 %v834_v0, %v834_v0 }
 0x713   : > { %v836_v3 = vsel %vm362_vm0, %v835_v1, 0.0 }
 0x714   : > { %837 = vadd.xlane.f32.xlu2 %v836_v3 }
 0x787   : > { %v838_v4 = vpop.xlane.xlu2 %837 }
 0x788   : > { %v839_v5 = vmul.f32 %v838_v4, %v1472_v48 }
 0x78a   : > { %v840_v7 = vadd.f32 1e-05, %v839_v5 }
 0x78c   : > { %1138 = vrsqrt.f32 %v840_v7  ;;  %vm847_vm15 = vweird.f32 %v840_v7 }
 0x792   : > { %v1139_v6 = vpop.eup %1138 }
 0x793   : > { %v842_v8 = vmul.f32 %v1139_v6, %v840_v7  ;;  %vm848_vm14 = vweird.f32 %v1139_v6 }
 0x794   : > { %vm849_vm1 = vmor %vm847_vm15, %vm848_vm14 }
 0x795   : > { %v843_v9 = vmul.f32 %v1139_v6, %v842_v8 }
 0x797   : > { %v844_v10 = vmul.f32 0.5, %v843_v9 }
 0x799   : > { %v845_v11 = vsub.f32 1.5, %v844_v10 }
 0x79b   : > { %v846_v12 = vmul.f32 %v1139_v6, %v845_v11 }
 0x79d   : > { %v850_v48 = vsel %vm849_vm1, %v1139_v6, %v846_v12 }
 0x79e   : > { %v851_v14 = vmul.f32 %v850_v48, %v834_v0 }
 0x7a0   : > { %v853_v16 = vmul.f32 %v1114_v13, %v851_v14 }
 0x7a2   : > { %v855_v17 = vadd.f32 %v1115_v15, %v853_v16 }
 0x7a4   : > { %856 = vst.msk [vmem:[%s328_s23] sm:$0xff] %vm362_vm0, %v855_v17 }
 0x7a5   : > { %1227 = shalt.err (!%p1224_p8)
}
 0x7a6   : > { %1039 = dma.vmem_to_hbm [thread:$0]  (%p1374_p5), %s871_s24, 128, %s873_s25, %s858_s9  }
 0x7a7 PF: > { %p1056_p9 = scmp.ge.s32.totalorder %s1270_s30, 2  ;;  %s884_s18 = sand.u32 1, %s1258_s27  }
 0x7a8   : > { %s885_s21 = scalar_lea.sflag [#allocation4], %s884_s18 }
 0x7a9   : > { %p1049_p10 = pnand %p1056_p9, %p1378_p6 }
 0x7ab   : > { %p1050_p11 = pneg %p1049_p10 }
 0x7ad   : > { %1253 = dma.done.wait (%p1050_p11), %s885_s21, 128  }
 0x7ae   : > { %1255 = vsyncadd (%p1050_p11), %s885_s21, 4294967168  ;;  %p20_p12 = scmp.ge.s32.totalorder %s1361_s11, 4   ;;  %s1547_s27 = smov %s1262_s28 }
 0x7af   : > { %s1548_s28 = smov %s1266_s29  ;;  %s1549_s29 = smov %s1372_s14 }
 0x7b0   : > { %s1550_s30 = smov %s1361_s11  ;;  %22 = sbr.rel (!%p20_p12) target bundleno = 5 (0x5), region = 96 }
 0x7b5   :  { %891 = vsyncpa [#allocation3], 1 }
 0x7b6   :  { %893 = vsyncpa [#allocation3 + $0x1], 1 }
 0x7b7   :  { %894 = vsyncpa [#allocation6], 1 }
 0x7b8   :  { %895 = vsyncpa [#allocation4], 1 }
 0x7b9   :  { %897 = vsyncpa [#allocation4 + $0x1], 1 }

</bundles_post_ra>
